<compile_context>
chip_gen: v6e
topology: v6e:2x2x1
jax: 0.10.0
libtpu: 0.0.40
codegen_flags: <defaults>
</compile_context>

<pallas_src>
import functools
import math

import jax
import jax.numpy as jnp
from jax.experimental import pallas as pl
from jax.experimental.pallas import tpu as pltpu


def make_positional_encoding(max_seq_len: int, embed_dim: int, dtype=jnp.float32):
    """Sinusoidal PE table, same formula as the PyTorch module.  Shape [S, E]."""
    assert embed_dim % 2 == 0, "embed_dim must be even (as in the PyTorch module)"
    position = jnp.arange(max_seq_len, dtype=jnp.float32)[:, None]            # [S, 1]
    div_term = jnp.exp(
        jnp.arange(0, embed_dim, 2, dtype=jnp.float32)
        * (-math.log(10000.0) / embed_dim)
    )                                                                         # [E/2]
    pe = jnp.zeros((max_seq_len, embed_dim), dtype=jnp.float32)
    pe = pe.at[:, 0::2].set(jnp.sin(position * div_term))
    pe = pe.at[:, 1::2].set(jnp.cos(position * div_term))
    return pe.astype(dtype)


def _sublane_multiple(itemsize: int) -> int:
    # Packed sublane tile: 8 rows for 4-byte, 16 for 2-byte, 32 for 1-byte dtypes.
    return {4: 8, 2: 16, 1: 32}.get(itemsize, 8)


def _pe_kernel(x_ref, pe_ref, *rest, apply_dropout, threshold, scale):
    """out = dropout(x + pe).  Blocks are (ts, E) [squeezed batch] or (tb, ts, E)."""
    if apply_dropout:
        bits_ref, o_ref = rest
    else:
        (o_ref,) = rest

    pe = pe_ref[...]                                  # (ts, E), same dtype as x
    if len(x_ref.shape) == 3:                         # (tb, ts, E) batch-folded block
        pe = pe[None, :, :]
    y = x_ref[...] + pe                               # native-dtype add (no f32 upcast)

    if apply_dropout:
        # P(keep) = P(bits >= threshold) = 1 - p + O(2^-32)  (inverted dropout).
        keep = bits_ref[...] >= jnp.uint32(threshold)
        y = jnp.where(keep, y * jnp.asarray(scale, y.dtype), jnp.asarray(0, y.dtype))

    o_ref[...] = y.astype(o_ref.dtype)


def _choose_tiles(B, S, E, itemsize, with_bits, budget_bytes):
    """Pick (tb, ts) so the double-buffered block working set fits `budget_bytes`."""
    sub = _sublane_multiple(itemsize)

    def working_set(tb, ts):
        x_blk = tb * ts * E * itemsize                 # out block is the same size
        bits_blk = tb * ts * E * 4 if with_bits else 0
        pe_blk = ts * E * itemsize
        return 2 * (2 * x_blk + bits_blk + pe_blk)     # x2 for double buffering

    # Sequence tile: whole sequence if it fits; otherwise the largest
    # sublane-aligned tile (capped at 1024 rows) that fits the budget.
    if S <= 1024 and working_set(1, S) <= budget_bytes:
        ts = S
    else:
        ts = max(sub, min(1024, (S // sub) * sub)) if S >= sub else S
        while ts > sub and working_set(1, ts) > budget_bytes:
            ts = max(sub, ((ts // 2) // sub) * sub)

    # Fold batch rows into the block only when one tile spans the whole sequence
    # (amortizes per-grid-step overhead for short-S / large-B workloads).
    tb = 1
    if ts == S:
        while tb < B and tb * 2 * S <= 1024 and working_set(tb * 2, ts) <= budget_bytes:
            tb *= 2
        tb = min(tb, B)
    return tb, ts


def positional_encoding(x, pe, *, dropout_rate=0.0, training=False, rng=None,
                        ts=None, tb=None, vmem_budget_bytes=12 * 1024 * 1024):
    """Pallas equivalent of PositionalEncoding.forward.

    Args:
      x:  [batch, seq_len, embed_dim] activations.
      pe: [max_seq_len, embed_dim] sinusoidal table (max_seq_len >= seq_len).
      dropout_rate: dropout probability p (as given to nn.Dropout).
      training: apply inverted dropout iff True and p > 0 (else identity, like eval()).
      rng: jax.random key for the dropout mask (required when dropout applies).
      ts / tb: optional overrides for the sequence / batch tile sizes.
    """
    B, S, E = x.shape
    assert pe.shape[0] >= S and pe.shape[1] == E
    itemsize = jnp.dtype(x.dtype).itemsize
    sub = _sublane_multiple(itemsize)

    apply_dropout = bool(training) and float(dropout_rate) > 0.0
    if apply_dropout:
        assert 0.0 < float(dropout_rate) < 1.0
        assert rng is not None, "training-mode dropout needs a jax.random key"

    auto_tb, auto_ts = _choose_tiles(B, S, E, itemsize, apply_dropout, vmem_budget_bytes)
    ts = auto_ts if ts is None else ts
    tb = auto_tb if tb is None else tb
    assert ts == S or ts % sub == 0

    # PE in the activation dtype; passed un-sliced (BlockSpec reads only the rows it
    # needs).  Only in the corner case where a ts == S block would be misaligned
    # against a longer table do we take a tiny wrapper slice (so the block spans the
    # array's full first dim and stays layout-legal).
    pe_in = pe.astype(x.dtype)
    if pe_in.shape[0] != S and ts == S and S % sub != 0:
        pe_in = pe_in[:S]

    # Seq-tile axis outermost, batch innermost -> PE tile revisited (no re-DMA)
    # across the batch loop; both axes independent -> megacore sharding on v7x.
    grid = (pl.cdiv(S, ts), pl.cdiv(B, tb))

    xblock = (None, ts, E) if tb == 1 else (tb, ts, E)
    x_spec = pl.BlockSpec(xblock, lambda s, b: (b, s, 0))
    pe_spec = pl.BlockSpec((ts, E), lambda s, b: (s, 0))
    out_spec = pl.BlockSpec(xblock, lambda s, b: (b, s, 0))

    in_specs = [x_spec, pe_spec]
    args = [x, pe_in]
    threshold = 0
    if apply_dropout:
        # Uniform u32 bits drawn once in the wrapper; mask is tiling-invariant and
        # deterministic per key.
        bits = jax.random.bits(rng, (B, S, E), dtype=jnp.uint32)
        in_specs.append(pl.BlockSpec(xblock, lambda s, b: (b, s, 0)))
        args.append(bits)
        threshold = min(int(float(dropout_rate) * (2.0 ** 32)), 2 ** 32 - 1)

    kernel = functools.partial(
        _pe_kernel,
        apply_dropout=apply_dropout,
        threshold=threshold,
        scale=(1.0 / (1.0 - float(dropout_rate))) if apply_dropout else 1.0,
    )

    return pl.pallas_call(
        kernel,
        out_shape=jax.ShapeDtypeStruct((B, S, E), x.dtype),
        grid=grid,
        in_specs=in_specs,
        out_specs=out_spec,
        compiler_params=pltpu.CompilerParams(
            dimension_semantics=("parallel", "parallel"),
            # Explicit scoped-VMEM limit: comfortably above the ~12 MiB block
            # budget, within physical limits on v5e/v6e/v7x.
            vmem_limit_bytes=32 * 1024 * 1024,
        ),
    )(*args)


if __name__ == "__main__":
    batch, seq_len, embed_dim = 2, 8, 128     # E multiple of 128 -> lane-dense stores
    max_seq_len = 16
    dropout_rate = 0.1

    key = jax.random.PRNGKey(0)
    kx, kdrop = jax.random.split(key)
    x = jax.random.normal(kx, (batch, seq_len, embed_dim), dtype=jnp.float32)
    pe = make_positional_encoding(max_seq_len, embed_dim, dtype=jnp.float32)

    # --- eval mode (dropout disabled): exact match against the reference ---
    out = positional_encoding(x, pe, dropout_rate=dropout_rate, training=False)
    out = jax.block_until_ready(out)
    ref = x + pe[None, :seq_len, :]
    assert out.shape == (batch, seq_len, embed_dim)
    assert jnp.allclose(out, ref, atol=1e-6, rtol=1e-6)

    # --- training mode (inverted dropout): kept entries are ref / (1 - p) ---
    # TODO(synk): dropout mask uses jax.random, so it will not bit-match torch's
    # RNG; the Bernoulli / inverted-scaling semantics are identical.
    out_tr = positional_encoding(
        x, pe, dropout_rate=dropout_rate, training=True, rng=kdrop
    )
    out_tr = jax.block_until_ready(out_tr)
    kept = out_tr != 0.0
    assert jnp.allclose(
        jnp.where(kept, out_tr * (1.0 - dropout_rate), 0.0),
        jnp.where(kept, ref, 0.0),
        atol=1e-5, rtol=1e-5,
    )
    # Sanity: at p=0.1 over 2048 elements the mask is neither all-keep nor all-drop.
    assert bool(kept.any()) and not bool(kept.all())

    print("KERNEL_OK")
</pallas_src>

<mosaic_0001>
module attributes {stable_mosaic.version = 11 : i64} {
  func.func @_pe_kernel(%arg0: i32, %arg1: i32, %arg2: memref<2x8x128xf32, #tpu.memory_space<vmem>>, %arg3: memref<8x128xf32, #tpu.memory_space<vmem>>, %arg4: memref<2x8x128xf32, #tpu.memory_space<vmem>>) attributes {dimension_semantics = [#tpu.dimension_semantics<parallel>, #tpu.dimension_semantics<parallel>], iteration_bounds = array<i64: 1, 1>, scalar_prefetch = 0 : i64, scratch_operands = 0 : i64, tpu.core_type = #tpu.core_type<tc>, window_params = [{transform_indices = @transform_0, window_bounds = array<i64: 2, 8, 128>}, {transform_indices = @transform_1, window_bounds = array<i64: 8, 128>}, {transform_indices = @transform_2, window_bounds = array<i64: 2, 8, 128>}]} {
    %c0 = arith.constant 0 : index
    %c0_0 = arith.constant 0 : index
    %0 = vector.load %arg3[%c0, %c0_0] : memref<8x128xf32, #tpu.memory_space<vmem>>, vector<8x128xf32>
    %1 = vector.shape_cast %0 : vector<8x128xf32> to vector<1x8x128xf32>
    %c0_1 = arith.constant 0 : index
    %c0_2 = arith.constant 0 : index
    %c0_3 = arith.constant 0 : index
    %2 = vector.load %arg2[%c0_1, %c0_2, %c0_3] : memref<2x8x128xf32, #tpu.memory_space<vmem>>, vector<2x8x128xf32>
    %3 = vector.broadcast %1 : vector<1x8x128xf32> to vector<2x8x128xf32>
    %4 = arith.addf %2, %3 : vector<2x8x128xf32>
    %c0_4 = arith.constant 0 : index
    %c0_5 = arith.constant 0 : index
    %c0_6 = arith.constant 0 : index
    %5 = vector.load %arg4[%c0_4, %c0_5, %c0_6] : memref<2x8x128xf32, #tpu.memory_space<vmem>>, vector<2x8x128xf32>
    tpu.vector_store %arg4[%c0_4, %c0_5, %c0_6], %4 {strides = array<i32>} : memref<2x8x128xf32, #tpu.memory_space<vmem>>, vector<2x8x128xf32>,
    return
  }
  func.func @transform_0(%arg0: i32, %arg1: i32) -> (i32, i32, i32) {
    %c0_i32 = arith.constant 0 : i32
    %c0_i32_0 = arith.constant 0 : i32
    return %arg1, %arg0, %c0_i32 : i32, i32, i32
  }
  func.func @transform_1(%arg0: i32, %arg1: i32) -> (i32, i32) {
    %c0_i32 = arith.constant 0 : i32
    %c0_i32_0 = arith.constant 0 : i32
    return %arg0, %c0_i32 : i32, i32
  }
  func.func @transform_2(%arg0: i32, %arg1: i32) -> (i32, i32, i32) {
    %c0_i32 = arith.constant 0 : i32
    %c0_i32_0 = arith.constant 0 : i32
    return %arg1, %arg0, %c0_i32 : i32, i32, i32
  }
}

</mosaic_0001>

<bundles_post_ra>
// kernel: tpu_custom_call.1
= control target key start
LH: loop header
LB: loop body
LE: loop exit
PB: predicated region body
PF: predicated region fallthrough
CT: control target
= control target key end

     0   :  { %7 = vsyncpa [#allocation3], 0  ;;  %s169_s0 = inlined_call_operand.hbm [shape: f32[2,8,128], index: 0, kind: input, shape index: {}]   ;;  %s170_s1 = inlined_call_operand.hbm [shape: f32[16,128], index: 1, kind: input, shape index: {}]   ;;  %s171_s2 = inlined_call_operand.hbm [shape: f32[2,8,128], index: 2, kind: output, shape index: {}]  }
   0x1   :  { %8 = vsyncpa [#allocation6], 0 }
   0x2   :  { %9 = vsyncpa [#allocation4], 0  ;;  %s134_s9 = smov [#allocation2]  }
   0x3   :  { %s15_s10 = sshll.u32 %s134_s9, 4  ;;  %s16_s10 = int_to_ptr.vmem [resolvable:$true] %s15_s10 }
   0x4   :  { %s76_s11 = scalar_lea.vmem %s16_s10, 256  ;;  %p81_p1 = scmp.lt.s32.totalorder %s16_s10, %s16_s10 }
   0x5   :  { %p77_p0 = scmp.ne.s32.totalorder %s16_s10, %s76_s11  ;;  %p82_p2 = scmp.lt.s32.totalorder %s76_s11, %s76_s11 }
   0x7   :  { %p83_p3 = por %p82_p2, %p81_p1 }
   0x9   :  { %p84_p4 = pnand %p83_p3, %p77_p0 }
   0xb   :  { %87 = shalt.err (!%p84_p4)
}
   0xc   :  { %s135_s12 = smov 128   ;;  %s136_s13 = smov 8  }
   0xd   :  { %21 = dma.hbm_to_vmem [thread:$0]  %s169_s0, 256, %s16_s10, [#allocation3], %s135_s12, %s135_s12, %s136_s13  }
   0xe   :  { %s137_s16 = smov [#allocation5]  }
   0xf   :  { %s28_s17 = sshll.u32 %s137_s16, 4  ;;  %s29_s17 = int_to_ptr.vmem [resolvable:$true] %s28_s17 }
  0x10   :  { %s96_s18 = scalar_lea.vmem %s29_s17, 128  ;;  %p101_p6 = scmp.lt.s32.totalorder %s29_s17, %s29_s17 }
  0x11   :  { %p97_p5 = scmp.ne.s32.totalorder %s29_s17, %s96_s18  ;;  %p102_p7 = scmp.lt.s32.totalorder %s96_s18, %s96_s18 }
  0x13   :  { %p103_p8 = por %p102_p7, %p101_p6 }
  0x15   :  { %p104_p9 = pnand %p103_p8, %p97_p5 }
  0x17   :  { %107 = shalt.err (!%p104_p9)
}
  0x18   :  { %31 = dma.hbm_to_vmem [thread:$0]  %s170_s1, 128, %s29_s17, [#allocation6]  }
  0x19   :  { %128 = dma.done.wait [#allocation3], 256  }
  0x1a   :  { %129 = vsyncadd [#allocation3], 4294967040 }
  0x1b   :  { %130 = dma.done.wait [#allocation6], 128  }
  0x1c   :  { %131 = vsyncadd [#allocation6], 4294967168  ;;  %s138_s21 = smov [#allocation7]   ;;  %v38_v0 = vld [vmem:[#allocation5] sm:$0xff]  ;;  %v39_v1 = vld [vmem:[#allocation2] sm:$0xff] }
  0x1d   :  { %s50_s0 = sshll.u32 %s138_s21, 4  ;;  %v40_v2 = vld [vmem:[#allocation2 + $0x8] sm:$0xff]  ;;  %v41_v3 = vadd.f32 %v39_v1, %v38_v0  ;;  %s51_s0 = int_to_ptr.vmem [resolvable:$true] %s50_s0 }
  0x1e   :  { %v42_v4 = vadd.f32 %v40_v2, %v38_v0  ;;  %s108_s22 = scalar_lea.vmem %s51_s0, 256  ;;  %p113_p11 = scmp.lt.s32.totalorder %s51_s0, %s51_s0 }
  0x1f   :  { %43 = vst [vmem:[#allocation7] sm:$0xff] %v41_v3  ;;  %p109_p10 = scmp.ne.s32.totalorder %s51_s0, %s108_s22  ;;  %p114_p12 = scmp.lt.s32.totalorder %s108_s22, %s108_s22 }
  0x20   :  { %44 = vst [vmem:[#allocation7 + $0x8] sm:$0xff] %v42_v4 }
  0x21   :  { %p115_p13 = por %p114_p12, %p113_p11 }
  0x23   :  { %p116_p0 = pnand %p115_p13, %p109_p10 }
  0x25   :  { %119 = shalt.err (!%p116_p0)
}
  0x26   :  { %56 = dma.vmem_to_hbm [thread:$0]  %s51_s0, 256, %s171_s2, [#allocation4], %s135_s12, %s135_s12, %s136_s13  }
  0x27   :  { %132 = dma.done.wait [#allocation4], 256  }
  0x28   :  { %133 = vsyncadd [#allocation4], 4294967040 }
  0x29   :  { %60 = vsyncpa [#allocation3], 1 }
  0x2a   :  { %61 = vsyncpa [#allocation6], 1 }
  0x2b   :  { %62 = vsyncpa [#allocation4], 1 }

</bundles_post_ra>
